<compile_context>
chip_gen: v7x
topology: tpu7x:2x2x1
jax: 0.10.0
libtpu: 0.0.40
codegen_flags: <defaults>
</compile_context>

<pallas_src>
import jax
import jax.numpy as jnp
from jax.experimental import pallas as pl
from jax.experimental.pallas import tpu as pltpu


# ----------------------------------------------------------------------------- kernel
def _make_fused_kernel(n_hidden_extra):
    """One fused kernel invocation computes ALL feature-MLPs for one batch tile."""
    if n_hidden_extra > 0:
        def kernel(x_ref, w_in_ref, b_in_ref, w_hid_ref, b_hid_ref,
                   w_out_ref, b_out_ref, o_ref):
            h = jnp.dot(x_ref[...], w_in_ref[...],
                        preferred_element_type=jnp.float32) + b_in_ref[...]
            h = jnp.maximum(h, 0.0)
            for l in range(n_hidden_extra):            # static unrolled loop
                h = jnp.dot(h, w_hid_ref[l],
                            preferred_element_type=jnp.float32) + b_hid_ref[l]
                h = jnp.maximum(h, 0.0)
            o_ref[...] = jnp.dot(h, w_out_ref[...],
                                 preferred_element_type=jnp.float32) + b_out_ref[...]
        return kernel
    else:
        def kernel(x_ref, w_in_ref, b_in_ref, w_out_ref, b_out_ref, o_ref):
            h = jnp.dot(x_ref[...], w_in_ref[...],
                        preferred_element_type=jnp.float32) + b_in_ref[...]
            h = jnp.maximum(h, 0.0)
            o_ref[...] = jnp.dot(h, w_out_ref[...],
                                 preferred_element_type=jnp.float32) + b_out_ref[...]
        return kernel


# ----------------------------------------------------------------------------- params
def init_params(key, features, hidden, num_blocks, out_mult):
    """Deterministic synthetic per-MLP parameters (same layout as the PyTorch module)."""
    n_hidden_extra = num_blocks - 1
    w_in = jnp.zeros((features, features, hidden), jnp.float32)
    b_in = jnp.zeros((features, 1, hidden), jnp.float32)
    w_hid = jnp.zeros((features, max(n_hidden_extra, 1), hidden, hidden), jnp.float32)
    b_hid = jnp.zeros((features, max(n_hidden_extra, 1), 1, hidden), jnp.float32)
    w_out = jnp.zeros((features, hidden, out_mult), jnp.float32)
    b_out = jnp.zeros((features, 1, out_mult), jnp.float32)

    for i in range(features):
        ki = jax.random.fold_in(key, i)
        k1, k2, k3, k4, k5, k6 = jax.random.split(ki, 6)
        in_dim = i + 1
        # first layer: true weight is (in_dim, hidden); rows in_dim..features-1 stay 0,
        # which reproduces data[:, :i+1] exactly when multiplying by the full (B, F) tile.
        w1 = jax.random.normal(k1, (in_dim, hidden), jnp.float32) / jnp.sqrt(in_dim)
        w_in = w_in.at[i, :in_dim, :].set(w1)
        b_in = b_in.at[i, 0, :].set(
            0.01 * jax.random.normal(k2, (hidden,), jnp.float32))
        for l in range(n_hidden_extra):
            kl = jax.random.fold_in(k3, l)
            w_hid = w_hid.at[i, l].set(
                jax.random.normal(kl, (hidden, hidden), jnp.float32) / jnp.sqrt(hidden))
            b_hid = b_hid.at[i, l, 0, :].set(
                0.01 * jax.random.normal(jax.random.fold_in(k4, l),
                                         (hidden,), jnp.float32))
        w_out = w_out.at[i].set(
            jax.random.normal(k5, (hidden, out_mult), jnp.float32) / jnp.sqrt(hidden))
        b_out = b_out.at[i, 0, :].set(
            0.01 * jax.random.normal(k6, (out_mult,), jnp.float32))

    return dict(w_in=w_in, b_in=b_in, w_hid=w_hid, b_hid=b_hid,
                w_out=w_out, b_out=b_out)


def fuse_params(params, *, features, hidden, num_blocks, out_mult):
    """Fuse the F independent MLPs into wide / block-diagonal weights (done once, host-side)."""
    F, H, M = features, hidden, out_mult
    L = num_blocks - 1
    FH, FM = F * H, F * M

    # First layer: columns [i*H:(i+1)*H] of the (F, F*H) matrix are MLP i's padded weight.
    w_in_f = jnp.transpose(params["w_in"], (1, 0, 2)).reshape(F, FH)
    b_in_f = params["b_in"][:, 0, :].reshape(1, FH)

    # Hidden layers: block-diagonal (L, F*H, F*H).
    w_hid_f = jnp.zeros((max(L, 1), FH, FH), jnp.float32)
    b_hid_f = jnp.zeros((max(L, 1), 1, FH), jnp.float32)
    for i in range(F):
        for l in range(L):
            w_hid_f = w_hid_f.at[l, i * H:(i + 1) * H, i * H:(i + 1) * H].set(
                params["w_hid"][i, l])
    if L > 0:
        b_hid_f = jnp.transpose(params["b_hid"][:, :L, 0, :], (1, 0, 2)).reshape(L, 1, FH)

    # Output layer: block layout (F*H, F*M) -> output already in torch.cat(dim=1) order.
    w_out_f = jnp.zeros((FH, FM), jnp.float32)
    for i in range(F):
        w_out_f = w_out_f.at[i * H:(i + 1) * H, i * M:(i + 1) * M].set(params["w_out"][i])
    b_out_f = params["b_out"][:, 0, :].reshape(1, FM)

    return dict(w_in=w_in_f, b_in=b_in_f, w_hid=w_hid_f, b_hid=b_hid_f,
                w_out=w_out_f, b_out=b_out_f)


# ----------------------------------------------------------------------------- forward
def get_net_forward(data, fused, *, features, hidden, num_blocks, out_mult):
    B, F = data.shape
    assert F == features
    L = num_blocks - 1
    FH, FM = features * hidden, features * out_mult
    kernel = _make_fused_kernel(L)

    # Batch tiling: single tile for small B, 512-row tiles (parallel) for large B.
    tile_b = B if B <= 512 else 512
    n_tiles = pl.cdiv(B, tile_b)
    b_pad = n_tiles * tile_b
    x = data if b_pad == B else jnp.pad(data, ((0, b_pad - B), (0, 0)))

    in_specs = [
        pl.BlockSpec((tile_b, F), lambda b: (b, 0)),      # data tile
        pl.BlockSpec((F, FH), lambda b: (0, 0)),          # fused first-layer weight
        pl.BlockSpec((1, FH), lambda b: (0, 0)),          # fused first-layer bias
    ]
    inputs = [x, fused["w_in"], fused["b_in"]]
    if L > 0:
        in_specs += [
            pl.BlockSpec((L, FH, FH), lambda b: (0, 0, 0)),   # block-diag hidden weights
            pl.BlockSpec((L, 1, FH), lambda b: (0, 0, 0)),    # hidden biases
        ]
        inputs += [fused["w_hid"], fused["b_hid"]]
    in_specs += [
        pl.BlockSpec((FH, FM), lambda b: (0, 0)),         # block output weight
        pl.BlockSpec((1, FM), lambda b: (0, 0)),          # output bias
    ]
    inputs += [fused["w_out"], fused["b_out"]]

    flops = 2 * b_pad * (F * FH + L * FH * FH + FH * FM)
    bytes_accessed = 4 * (b_pad * F + F * FH + FH + L * FH * FH + L * FH
                          + FH * FM + FM + b_pad * FM)

    out = pl.pallas_call(
        kernel,
        grid=(n_tiles,),
        in_specs=in_specs,
        out_specs=pl.BlockSpec((tile_b, FM), lambda b: (b, 0)),   # lane-dense final layout
        out_shape=jax.ShapeDtypeStruct((b_pad, FM), jnp.float32),
        compiler_params=pltpu.CompilerParams(
            dimension_semantics=("parallel",)),
        cost_estimate=pl.CostEstimate(flops=flops, transcendentals=0,
                                      bytes_accessed=bytes_accessed),
    )(*inputs)

    return out[:B] if b_pad != B else out


# ----------------------------------------------------------------------------- reference
def reference_forward(data, params, *, features, num_blocks):
    """Pure-JAX reference matching the PyTorch forward semantics (per-MLP, unfused)."""
    outs = []
    for i in range(features):
        h = jnp.maximum(data @ params["w_in"][i] + params["b_in"][i, 0], 0.0)
        for l in range(num_blocks - 1):
            h = jnp.maximum(h @ params["w_hid"][i, l] + params["b_hid"][i, l, 0], 0.0)
        outs.append(h @ params["w_out"][i] + params["b_out"][i, 0])
    return jnp.concatenate(outs, axis=1)


if __name__ == "__main__":
    features = 4
    hidden_features = 32
    num_blocks = 2
    output_multiplier = 8
    batch = 8

    key = jax.random.PRNGKey(0)
    kp, kd = jax.random.split(key)
    params = init_params(kp, features, hidden_features, num_blocks, output_multiplier)
    fused = fuse_params(params, features=features, hidden=hidden_features,
                        num_blocks=num_blocks, out_mult=output_multiplier)
    data = jax.random.normal(kd, (batch, features), jnp.float32)

    out = get_net_forward(data, fused, features=features, hidden=hidden_features,
                          num_blocks=num_blocks, out_mult=output_multiplier)
    out = jax.block_until_ready(out)

    ref = reference_forward(data, params, features=features, num_blocks=num_blocks)
    assert out.shape == (batch, features * output_multiplier), out.shape
    assert jnp.allclose(out, ref, atol=1e-4, rtol=1e-4), "mismatch vs reference"

    print("KERNEL_OK")
</pallas_src>

<mosaic_0001>
module attributes {stable_mosaic.version = 11 : i64} {
  func.func @kernel(%arg0: i32, %arg1: memref<8x4xf32, #tpu.memory_space<vmem>>, %arg2: memref<4x128xf32, #tpu.memory_space<vmem>>, %arg3: memref<1x128xf32, #tpu.memory_space<vmem>>, %arg4: memref<1x128x128xf32, #tpu.memory_space<vmem>>, %arg5: memref<1x1x128xf32, #tpu.memory_space<vmem>>, %arg6: memref<128x32xf32, #tpu.memory_space<vmem>>, %arg7: memref<1x32xf32, #tpu.memory_space<vmem>>, %arg8: memref<8x32xf32, #tpu.memory_space<vmem>>) attributes {dimension_semantics = [#tpu.dimension_semantics<parallel>], iteration_bounds = array<i64: 1>, scalar_prefetch = 0 : i64, scratch_operands = 0 : i64, tpu.core_type = #tpu.core_type<tc>, window_params = [{transform_indices = @transform_0, window_bounds = array<i64: 8, 4>}, {pipeline_mode = #tpu.pipeline_mode<synchronous>, transform_indices = @transform_1, window_bounds = array<i64: 4, 128>}, {pipeline_mode = #tpu.pipeline_mode<synchronous>, transform_indices = @transform_2, window_bounds = array<i64: 1, 128>}, {pipeline_mode = #tpu.pipeline_mode<synchronous>, transform_indices = @transform_3, window_bounds = array<i64: 1, 128, 128>}, {pipeline_mode = #tpu.pipeline_mode<synchronous>, transform_indices = @transform_4, window_bounds = array<i64: 1, 1, 128>}, {pipeline_mode = #tpu.pipeline_mode<synchronous>, transform_indices = @transform_5, window_bounds = array<i64: 128, 32>}, {pipeline_mode = #tpu.pipeline_mode<synchronous>, transform_indices = @transform_6, window_bounds = array<i64: 1, 32>}, {transform_indices = @transform_7, window_bounds = array<i64: 8, 32>}]} {
    %c0 = arith.constant 0 : index
    %c0_0 = arith.constant 0 : index
    %0 = vector.load %arg1[%c0, %c0_0] : memref<8x4xf32, #tpu.memory_space<vmem>>, vector<8x4xf32>
    %c0_1 = arith.constant 0 : index
    %c0_2 = arith.constant 0 : index
    %1 = vector.load %arg2[%c0_1, %c0_2] : memref<4x128xf32, #tpu.memory_space<vmem>>, vector<4x128xf32>
    %cst = arith.constant dense<0.000000e+00> : vector<8x128xf32>
    %2 = tpu.matmul %0, %1, %cst {dimension_numbers = #tpu.dot_dimension_numbers<[1], [0], [0], [1], [0, 0, 1, 1], [], []>} : vector<8x4xf32>, vector<4x128xf32>, vector<8x128xf32> -> vector<8x128xf32>
    %c0_3 = arith.constant 0 : index
    %c0_4 = arith.constant 0 : index
    %3 = vector.load %arg3[%c0_3, %c0_4] : memref<1x128xf32, #tpu.memory_space<vmem>>, vector<1x128xf32>
    %4 = vector.broadcast %3 : vector<1x128xf32> to vector<8x128xf32>
    %5 = arith.addf %2, %4 : vector<8x128xf32>
    %cst_5 = arith.constant 0.000000e+00 : f32
    %6 = vector.broadcast %cst_5 : f32 to vector<8x128xf32>
    %7 = arith.maximumf %5, %6 : vector<8x128xf32>
    %c0_6 = arith.constant 0 : index
    %c0_7 = arith.constant 0 : index
    %c0_8 = arith.constant 0 : index
    %8 = vector.load %arg4[%c0_6, %c0_7, %c0_8] : memref<1x128x128xf32, #tpu.memory_space<vmem>>, vector<1x128x128xf32>
    %9 = vector.shape_cast %8 : vector<1x128x128xf32> to vector<128x128xf32>
    %cst_9 = arith.constant dense<0.000000e+00> : vector<8x128xf32>
    %10 = tpu.matmul %7, %9, %cst_9 {dimension_numbers = #tpu.dot_dimension_numbers<[1], [0], [0], [1], [0, 0, 1, 1], [], []>} : vector<8x128xf32>, vector<128x128xf32>, vector<8x128xf32> -> vector<8x128xf32>
    %c0_10 = arith.constant 0 : index
    %c0_11 = arith.constant 0 : index
    %c0_12 = arith.constant 0 : index
    %11 = vector.load %arg5[%c0_10, %c0_11, %c0_12] : memref<1x1x128xf32, #tpu.memory_space<vmem>>, vector<1x1x128xf32>
    %12 = vector.shape_cast %11 : vector<1x1x128xf32> to vector<1x128xf32>
    %13 = vector.broadcast %12 : vector<1x128xf32> to vector<8x128xf32>
    %14 = arith.addf %10, %13 : vector<8x128xf32>
    %cst_13 = arith.constant 0.000000e+00 : f32
    %15 = vector.broadcast %cst_13 : f32 to vector<8x128xf32>
    %16 = arith.maximumf %14, %15 : vector<8x128xf32>
    %c0_14 = arith.constant 0 : index
    %c0_15 = arith.constant 0 : index
    %17 = vector.load %arg6[%c0_14, %c0_15] : memref<128x32xf32, #tpu.memory_space<vmem>>, vector<128x32xf32>
    %cst_16 = arith.constant dense<0.000000e+00> : vector<8x32xf32>
    %18 = tpu.matmul %16, %17, %cst_16 {dimension_numbers = #tpu.dot_dimension_numbers<[1], [0], [0], [1], [0, 0, 1, 1], [], []>} : vector<8x128xf32>, vector<128x32xf32>, vector<8x32xf32> -> vector<8x32xf32>
    %c0_17 = arith.constant 0 : index
    %c0_18 = arith.constant 0 : index
    %19 = vector.load %arg7[%c0_17, %c0_18] : memref<1x32xf32, #tpu.memory_space<vmem>>, vector<1x32xf32>
    %20 = vector.broadcast %19 : vector<1x32xf32> to vector<8x32xf32>
    %21 = arith.addf %18, %20 : vector<8x32xf32>
    %c0_19 = arith.constant 0 : index
    %c0_20 = arith.constant 0 : index
    %22 = vector.load %arg8[%c0_19, %c0_20] : memref<8x32xf32, #tpu.memory_space<vmem>>, vector<8x32xf32>
    tpu.vector_store %arg8[%c0_19, %c0_20], %21 {strides = array<i32>} : memref<8x32xf32, #tpu.memory_space<vmem>>, vector<8x32xf32>,
    return
  }
  func.func @transform_0(%arg0: i32) -> (i32, i32) {
    %c0_i32 = arith.constant 0 : i32
    %c0_i32_0 = arith.constant 0 : i32
    return %arg0, %c0_i32 : i32, i32
  }
  func.func @transform_1(%arg0: i32) -> (i32, i32) {
    %c0_i32 = arith.constant 0 : i32
    %c0_i32_0 = arith.constant 0 : i32
    %c0_i32_1 = arith.constant 0 : i32
    return %c0_i32, %c0_i32_0 : i32, i32
  }
  func.func @transform_2(%arg0: i32) -> (i32, i32) {
    %c0_i32 = arith.constant 0 : i32
    %c0_i32_0 = arith.constant 0 : i32
    %c0_i32_1 = arith.constant 0 : i32
    return %c0_i32, %c0_i32_0 : i32, i32
  }
  func.func @transform_3(%arg0: i32) -> (i32, i32, i32) {
    %c0_i32 = arith.constant 0 : i32
    %c0_i32_0 = arith.constant 0 : i32
    %c0_i32_1 = arith.constant 0 : i32
    %c0_i32_2 = arith.constant 0 : i32
    return %c0_i32, %c0_i32_0, %c0_i32_1 : i32, i32, i32
  }
  func.func @transform_4(%arg0: i32) -> (i32, i32, i32) {
    %c0_i32 = arith.constant 0 : i32
    %c0_i32_0 = arith.constant 0 : i32
    %c0_i32_1 = arith.constant 0 : i32
    %c0_i32_2 = arith.constant 0 : i32
    return %c0_i32, %c0_i32_0, %c0_i32_1 : i32, i32, i32
  }
  func.func @transform_5(%arg0: i32) -> (i32, i32) {
    %c0_i32 = arith.constant 0 : i32
    %c0_i32_0 = arith.constant 0 : i32
    %c0_i32_1 = arith.constant 0 : i32
    return %c0_i32, %c0_i32_0 : i32, i32
  }
  func.func @transform_6(%arg0: i32) -> (i32, i32) {
    %c0_i32 = arith.constant 0 : i32
    %c0_i32_0 = arith.constant 0 : i32
    %c0_i32_1 = arith.constant 0 : i32
    return %c0_i32, %c0_i32_0 : i32, i32
  }
  func.func @transform_7(%arg0: i32) -> (i32, i32) {
    %c0_i32 = arith.constant 0 : i32
    %c0_i32_0 = arith.constant 0 : i32
    return %arg0, %c0_i32 : i32, i32
  }
}

</mosaic_0001>

<bundles_post_ra>
// kernel: tpu_custom_call.1
= control target key start
LH: loop header
LB: loop body
LE: loop exit
PB: predicated region body
PF: predicated region fallthrough
CT: control target
= control target key end

     0   :  { %vm40_vm0 = vcmask 1043456   ;;  %v510_v2 = vmov 0.0   ;;  %vm511_vm1 = vmmov 0   ;;  %vm36_vm2 = vcmask 31744   ;;  %s696_s0 = inlined_call_operand.vmem [shape: f32[8,4], index: 0, kind: input, shape index: {}]   ;;  %s697_s1 = inlined_call_operand.vmem [shape: f32[4,128], index: 1, kind: input, shape index: {}]   ;;  %s698_s2 = inlined_call_operand.vmem [shape: f32[1,128], index: 2, kind: input, shape index: {}]   ;;  %s699_s3 = inlined_call_operand.vmem [shape: f32[1,128,128], index: 3, kind: input, shape index: {}]   ;;  %s700_s4 = inlined_call_operand.vmem [shape: f32[1,1,128], index: 4, kind: input, shape index: {}]   ;;  %s701_s5 = inlined_call_operand.vmem [shape: f32[128,32], index: 5, kind: input, shape index: {}]   ;;  %s702_s6 = inlined_call_operand.vmem [shape: f32[1,32], index: 6, kind: input, shape index: {}]   ;;  %s703_s7 = inlined_call_operand.hbm [shape: f32[8,32], index: 7, kind: output, shape index: {}]  }
   0x1   :  { %v28_v0 = vld [vmem:[%s697_s1] sm:$0xf]  ;;  %359 = vmatprep.subr.mxu0 %v510_v2  ;;  %361 = vmatprep.mubr.msk.f32.mxu0 %vm511_vm1, %v510_v2  ;;  %v116_v4 = vld [vmem:[%s699_s3 + $0x8] sm:$0xff]  ;;  %v117_v5 = vld [vmem:[%s699_s3 + $0x10] sm:$0xff]  ;;  %v512_v6 = vmov 0.0|0.0  }
   0x2   :  { %v27_v1 = vld [vmem:[%s696_s0] sm:$0xff]  ;;  %360 = vmatpush3.msk.msra.mxu0 %vm40_vm0, %v28_v0  ;;  %434 = vmatprep.subr.bf16.mxu1 %v512_v6  ;;  %v118_v8 = vld [vmem:[%s699_s3 + $0x18] sm:$0xff]  ;;  %v120_v11 = vld [vmem:[%s699_s3 + $0x28] sm:$0xff] }
   0x3   :  { %v115_v3 = vld [vmem:[%s699_s3] sm:$0xff]  ;;  %362 = vmatmul.mubr.msk.f32.vlgmr.msra.gmra.mrb[0].mxu0 %vm36_vm2, %v27_v1  ;;  %396 = vmatprep.mubr.msk.f32.mxu1 %vm511_vm1, %v510_v2  ;;  %v438_v9 = vpack.c.bf16 %v118_v8, %v117_v5 }
   0x4   :  { %v435_v7 = vpack.c.bf16 %v116_v4, %v115_v3  ;;  %458 = vmatprep.subr.bf16.mxu0 %v512_v6  ;;  %v119_v10 = vld [vmem:[%s699_s3 + $0x20] sm:$0xff]  ;;  %431 = vmatprep.mubr.msk.f32.mxu0 %vm511_vm1, %v510_v2 }
   0x6   :  { %436 = vmatpush3.bf16.msra.mxu1 %v435_v7 }
   0x7   :  { %437 = vmatprep.subr.bf16.mxu1 %v512_v6 }
   0x8   :  { %12 = vsyncpa [#allocation3], 0  ;;  %v441_v12 = vpack.c.bf16 %v120_v11, %v119_v10  ;;  %v121_v13 = vld [vmem:[%s699_s3 + $0x30] sm:$0xff]  ;;  %v122_v14 = vld [vmem:[%s699_s3 + $0x38] sm:$0xff]  ;;  %s513_s20 = smov [#allocation2]   ;;  %vm302_vm3 = vcmask 261120  }
   0x9   :  { %v444_v15 = vpack.c.bf16 %v122_v14, %v121_v13  ;;  %v123_v16 = vld [vmem:[%s699_s3 + $0x40] sm:$0xff]  ;;  %v124_v17 = vld [vmem:[%s699_s3 + $0x48] sm:$0xff]  ;;  %v125_v19 = vld [vmem:[%s699_s3 + $0x50] sm:$0xff]  ;;  %s310_s21 = sshll.u32 %s513_s20, 4  ;;  %s311_s21 = int_to_ptr.vmem [resolvable:$true] %s310_s21 }
   0xa   :  { %439 = vmatpush3.bf16.msra.mxu1 %v438_v9  ;;  %v447_v18 = vpack.c.bf16 %v124_v17, %v123_v16  ;;  %v126_v20 = vld [vmem:[%s699_s3 + $0x58] sm:$0xff]  ;;  %v127_v22 = vld [vmem:[%s699_s3 + $0x60] sm:$0xff]  ;;  %v128_v23 = vld [vmem:[%s699_s3 + $0x68] sm:$0xff]  ;;  %p491_p1 = scmp.lt.s32.totalorder %s311_s21, %s311_s21 }
   0xb   :  { %440 = vmatprep.subr.bf16.mxu1 %v512_v6  ;;  %v450_v21 = vpack.c.bf16 %v126_v20, %v125_v19  ;;  %v453_v24 = vpack.c.bf16 %v128_v23, %v127_v22  ;;  %v129_v25 = vld [vmem:[%s699_s3 + $0x70] sm:$0xff]  ;;  %v130_v26 = vld [vmem:[%s699_s3 + $0x78] sm:$0xff]  ;;  %v209_v28 = vld [vmem:[%s701_s5] sm:$0xff] }
   0xc   :  { %v456_v27 = vpack.c.bf16 %v130_v26, %v129_v25  ;;  %v210_v29 = vld [vmem:[%s701_s5 + $0x8] sm:$0xff]  ;;  %v211_v30 = vld [vmem:[%s701_s5 + $0x10] sm:$0xff]  ;;  %v212_v32 = vld [vmem:[%s701_s5 + $0x18] sm:$0xff] }
   0xd   :  { %v459_v31 = vpack.c.bf16 %v210_v29, %v209_v28  ;;  %v462_v33 = vpack.c.bf16 %v212_v32, %v211_v30  ;;  %v213_v34 = vld [vmem:[%s701_s5 + $0x20] sm:$0xff]  ;;  %v214_v35 = vld [vmem:[%s701_s5 + $0x28] sm:$0xff]  ;;  %v215_v37 = vld [vmem:[%s701_s5 + $0x30] sm:$0xff] }
   0xe   :  { %442 = vmatpush3.bf16.msra.mxu1 %v441_v12  ;;  %v465_v36 = vpack.c.bf16 %v214_v35, %v213_v34  ;;  %v216_v38 = vld [vmem:[%s701_s5 + $0x38] sm:$0xff]  ;;  %v217_v40 = vld [vmem:[%s701_s5 + $0x40] sm:$0xff]  ;;  %v218_v41 = vld [vmem:[%s701_s5 + $0x48] sm:$0xff] }
   0xf   :  { %443 = vmatprep.subr.bf16.mxu1 %v512_v6  ;;  %460 = vmatpush3.bf16.msra.mxu0 %v459_v31  ;;  %v468_v39 = vpack.c.bf16 %v216_v38, %v215_v37  ;;  %v471_v42 = vpack.c.bf16 %v218_v41, %v217_v40  ;;  %v219_v43 = vld [vmem:[%s701_s5 + $0x50] sm:$0xff]  ;;  %v220_v44 = vld [vmem:[%s701_s5 + $0x58] sm:$0xff]  ;;  %v221_v46 = vld [vmem:[%s701_s5 + $0x60] sm:$0xff] }
  0x10   :  { %461 = vmatprep.subr.bf16.mxu0 %v512_v6  ;;  %v474_v45 = vpack.c.bf16 %v220_v44, %v219_v43  ;;  %v222_v47 = vld [vmem:[%s701_s5 + $0x68] sm:$0xff]  ;;  %v318_v49 = vld [vmem:[%s698_s2] ss:$0 sm:$0xff]  ;;  %v223_v54 = vld [vmem:[%s701_s5 + $0x70] sm:$0xff] }
  0x11   :  { %v477_v48 = vpack.c.bf16 %v222_v47, %v221_v46  ;;  %v224_v55 = vld [vmem:[%s701_s5 + $0x78] sm:$0xff]  ;;  %v321_v57 = vld [vmem:[%s700_s4] ss:$0 sm:$0xff]  ;;  %s486_s5 = scalar_lea.vmem %s311_s21, 128 }
  0x12   :  { %445 = vmatpush3.bf16.msra.mxu1 %v444_v15  ;;  %v480_v56 = vpack.c.bf16 %v224_v55, %v223_v54  ;;  %v322_v62 = vld [vmem:[%s702_s6] ss:$0 sm:$0xff]  ;;  %p487_p0 = scmp.ne.s32.totalorder %s311_s21, %s486_s5  ;;  %p492_p2 = scmp.lt.s32.totalorder %s486_s5, %s486_s5 }
  0x13   :  { %446 = vmatprep.subr.bf16.mxu1 %v512_v6  ;;  %463 = vmatpush3.bf16.msra.mxu0 %v462_v33 }
  0x14   :  { %464 = vmatprep.subr.bf16.mxu0 %v512_v6  ;;  %p493_p3 = por %p492_p2, %p491_p1 }
  0x16   :  { %448 = vmatpush3.bf16.msra.mxu1 %v447_v18  ;;  %p494_p4 = pnand %p493_p3, %p487_p0 }
  0x17   :  { %449 = vmatprep.subr.bf16.mxu1 %v512_v6  ;;  %466 = vmatpush3.bf16.msra.mxu0 %v465_v36 }
  0x18   :  { %467 = vmatprep.subr.bf16.mxu0 %v512_v6 }
  0x1a   :  { %451 = vmatpush3.bf16.msra.mxu1 %v450_v21 }
  0x1b   :  { %452 = vmatprep.subr.bf16.mxu1 %v512_v6  ;;  %469 = vmatpush3.bf16.msra.mxu0 %v468_v39 }
  0x1c   :  { %470 = vmatprep.subr.bf16.mxu0 %v512_v6 }
  0x1e   :  { %454 = vmatpush3.bf16.msra.mxu1 %v453_v24 }
  0x1f   :  { %455 = vmatprep.subr.bf16.mxu1 %v512_v6  ;;  %472 = vmatpush3.bf16.msra.mxu0 %v471_v42 }
  0x20   :  { %473 = vmatprep.subr.bf16.mxu0 %v512_v6 }
  0x22   :  { %457 = vmatpush3.bf16.msra.mxu1 %v456_v27 }
  0x23   :  { %475 = vmatpush3.bf16.msra.mxu0 %v474_v45 }
  0x24   :  { %476 = vmatprep.subr.bf16.mxu0 %v512_v6 }
  0x27   :  { %478 = vmatpush3.bf16.msra.mxu0 %v477_v48 }
  0x28   :  { %479 = vmatprep.subr.bf16.mxu0 %v512_v6 }
  0x2b   :  { %481 = vmatpush3.bf16.msra.mxu0 %v480_v56 }
  0xd6   :  { %v110_v50 = vpop.f32.mrb[0].mxu0 }
  0xd7   :  { %v111_v51 = vadd.f32 %v318_v49, %v110_v50  ;;  %v363_v52 = vpop.f32.mrb[1].mxu0 }
  0xd9   :  { %v114_v53 = vmax.f32 %v111_v51, 0.0 }
  0xdb   :  { %397 = vmatmul.mubr.f32.vlgmr.msra.gmra.mrb[0].mxu1 %v114_v53 }
 0x1ae   :  { %v204_v58 = vpop.f32.mrb[0].mxu1 }
 0x1af   :  { %v205_v59 = vadd.f32 %v321_v57, %v204_v58  ;;  %v398_v60 = vpop.f32.mrb[1].mxu1 }
 0x1b1   :  { %v208_v61 = vmax.f32 %v205_v59, 0.0 }
 0x1b3   :  { %432 = vmatmul.mubr.f32.vlgmr.msra.gmra.mrb[2].mxu0 %v208_v61 }
 0x286   :  { %v298_v63 = vpop.f32.mrb[2].mxu0 }
 0x287   :  { %v299_v0 = vadd.f32 %v322_v62, %v298_v63  ;;  %v433_v1 = vpop.f32.mrb[3].mxu0 }
 0x289   :  { %303 = vst.msk [vmem:[#allocation2] sm:$0xff] %vm302_vm3, %v299_v0 }
 0x28a   :  { %497 = shalt.err (!%p494_p4)
}
 0x28b   :  { %s498_s23 = scalar_lea.hbm %s703_s7, 128 }
 0x28c   :  { %p499_p5 = scmp.ne.s32.totalorder %s703_s7, %s498_s23  ;;  %p502_p6 = scmp.lt.u32.totalorder %s498_s23, %s703_s7 }
 0x28e   :  { %p504_p7 = pnand %p502_p6, %p499_p5 }
 0x290   :  { %507 = shalt.err (!%p504_p7)
}
 0x291   :  { %313 = dma.vmem_to_hbm [thread:$0]  %s311_s21, 128, %s703_s7, [#allocation3]  }
 0x292   :  { %508 = dma.done.wait [#allocation3], 128  }
 0x293   :  { %509 = vsyncadd [#allocation3], 4294967168 }
 0x294   :  { %317 = vsyncpa [#allocation3], 1 }

</bundles_post_ra>
